<compile_context>
chip_gen: v7x
topology: tpu7x:2x2x1
jax: 0.10.0
libtpu: 0.0.40
codegen_flags: <defaults>
</compile_context>

<pallas_src>
import functools

import jax
import jax.numpy as jnp
from jax import lax
from jax.experimental import pallas as pl
from jax.experimental.pallas import tpu as pltpu

_LANES = 128


def _ru8(x):
    return ((x + 7) // 8) * 8


# --------------------------------------------------------------------------
# Fused kernel (one batch element per grid step):
#   shared point MLP -> max-pool -> fused FC head -> packed PACE statistics
# --------------------------------------------------------------------------
def _detector_pace_kernel(pts_ref, par_ref, out_ref, *, H1, H2, N, rows):
    (r_w1, r_b1, r_b2, r_b3, r_p, r_w2, r_w3) = rows

    x = pts_ref[...]                                  # (m, 8)  lanes 3..7 are zero-pad
    w1 = par_ref[r_w1:r_w1 + 8, 0:H1]                 # (8, H1) rows 3..7 are zero-pad
    b1 = par_ref[r_b1:r_b1 + 1, 0:H1]                 # (1, H1)
    b2 = par_ref[r_b2:r_b2 + 1, 0:H2]                 # (1, H2)
    b3 = par_ref[r_b3:r_b3 + 1, 0:3 * N]              # (1, 3N)
    pmat = par_ref[r_p:r_p + N, :]                    # (N, 128) packing / PACE-stats matrix
    w2 = par_ref[r_w2:r_w2 + H1, 0:H2]                # (H1, H2)
    w3 = par_ref[r_w3:r_w3 + H2, 0:3 * N]             # (H2, 3N) fused head weights

    # ---- shared per-point MLP (MXU; contraction dims 8 / H1) ----
    # TODO(synk): for large m cast h1/w2 (and g/w3) to bf16 for the MXU passes.
    h1 = jnp.maximum(jnp.dot(x, w1, preferred_element_type=jnp.float32) + b1, 0.0)   # (m, H1)
    h2 = jnp.maximum(jnp.dot(h1, w2, preferred_element_type=jnp.float32) + b2, 0.0)  # (m, H2)

    # ---- global max-pool over the points of this batch element (sublane reduce) ----
    g = jnp.max(h2, axis=0, keepdims=True)                                            # (1, H2)

    # ---- fused FC head: one (1,H2)@(H2,3N) matmul; columns ordered [x|y|z] ----
    head = jnp.dot(g, w3, preferred_element_type=jnp.float32) + b3                    # (1, 3N)
    y = jnp.concatenate([head[:, 0:N], head[:, N:2 * N], head[:, 2 * N:3 * N]],
                        axis=0)                                                       # (3, N)

    # ---- packed epilogue: keypoints | M^T | weighted centroid, one MXU pass,
    #      one full-width lane-dense store ----
    out_ref[...] = jnp.dot(y, pmat, preferred_element_type=jnp.float32)               # (3, 128)


# --------------------------------------------------------------------------
# ProposedModel
# --------------------------------------------------------------------------
class ProposedModelPallas:
    H1 = 64
    H2 = 128

    def __init__(self, model_keypoints, cad_models, weights=None,
                 lambda_constant=None, key=None):
        self.model_keypoints = model_keypoints          # (K, 3, N)
        self.cad_models = cad_models                    # (K, 3, n)  (unused in forward)
        self.K = model_keypoints.shape[0]
        self.N = model_keypoints.shape[-1]
        K, N, H1, H2 = self.K, self.N, self.H1, self.H2
        assert 3 * N <= _LANES and N + 3 * K + 1 <= _LANES
        assert H1 <= _LANES and H2 <= _LANES

        if weights is None:
            weights = jnp.ones((N, 1), jnp.float32)
        self.weights = weights
        if lambda_constant is None:
            lambda_constant = jnp.sqrt(jnp.array([N / K], jnp.float32))
        self.lambda_constant = lambda_constant

        # ---- keypoint detector parameters (deterministic init) ----
        if key is None:
            key = jax.random.PRNGKey(0)
        k1, k2, k3 = jax.random.split(key, 3)
        w1 = 0.5 * jax.random.normal(k1, (3, H1), jnp.float32)
        b1 = jnp.zeros((1, H1), jnp.float32)
        w2 = (1.0 / H1) ** 0.5 * jax.random.normal(k2, (H1, H2), jnp.float32)
        b2 = jnp.zeros((1, H2), jnp.float32)
        w3 = (1.0 / H2) ** 0.5 * jax.random.normal(k3, (3, H2, N), jnp.float32)
        b3 = jnp.zeros((3, 1, N), jnp.float32)
        w3_packed = jnp.transpose(w3, (1, 0, 2)).reshape(H2, 3 * N)   # col c*N+n = w3[c,:,n]
        b3_packed = b3.reshape(1, 3 * N)

        # ---- PACE precomputations (consistent normalized weights wn everywhere) ----
        w = self.weights[:, 0]
        wn = w / jnp.sum(w)                                          # (N,) sums to 1
        bmean = jnp.einsum('kcn,n->kc', model_keypoints, wn)         # (K, 3) weighted centroids
        bbar = model_keypoints - bmean[:, :, None]                   # (K, 3, N) centered bases
        bbarw = (bbar * wn[None, None, :]).reshape(3 * K, N)         # (3K, N), zero weighted row sums
        A = jnp.einsum('kcn,n,lcn->kl', bbar, wn, bbar)              # (K, K)
        lam2 = self.lambda_constant[0] ** 2
        self.A_reg = A + lam2 * jnp.eye(K, dtype=jnp.float32)
        self.bmeanT = bmean.T                                        # (3, K)

        # ---- packing / PACE-statistics matrix:  slab = y @ P  gives
        #   lanes [0,N)        -> keypoints y
        #   lanes [N,N+3K)     -> M^T = ybar diag(wn) bbar^T   (centroid term vanishes)
        #   lane  N+3K         -> weighted centroid ymean
        P = jnp.zeros((N, _LANES), jnp.float32)
        P = P.at[:, 0:N].set(jnp.eye(N, dtype=jnp.float32))
        P = P.at[:, N:N + 3 * K].set(bbarw.T)
        P = P.at[:, N + 3 * K].set(wn)

        # ---- single lane-padded parameter slab (one input DMA) ----
        r_w1, r_b1, r_b2, r_b3 = 0, 8, 9, 10
        r_p = _ru8(r_b3 + 1)
        r_w2 = _ru8(r_p + N)
        r_w3 = r_w2 + H1
        rows_total = _ru8(r_w3 + H2)
        slab = jnp.zeros((rows_total, _LANES), jnp.float32)
        slab = slab.at[r_w1:r_w1 + 3, 0:H1].set(w1)        # rows 3..7 stay zero (pad)
        slab = slab.at[r_b1, 0:H1].set(b1[0])
        slab = slab.at[r_b2, 0:H2].set(b2[0])
        slab = slab.at[r_b3, 0:3 * N].set(b3_packed[0])
        slab = slab.at[r_p:r_p + N, :].set(P)
        slab = slab.at[r_w2:r_w2 + H1, 0:H2].set(w2)
        slab = slab.at[r_w3:r_w3 + H2, 0:3 * N].set(w3_packed)
        self.param_slab = slab
        self._rows = (r_w1, r_b1, r_b2, r_b3, r_p, r_w2, r_w3)

    # ---- PACE solve glue (tiny batched 3x3 / KxK linear algebra -> plain JAX) ----
    def _pace_solve(self, mt, ymean):
        """mt (B,3,3K) = M^T, ymean (B,3,1) -> R (B,3,3), t (B,3,1), c (B,K,1)."""
        B, K = mt.shape[0], self.K
        Hk = mt.reshape(B, 3, K, 3).transpose(0, 2, 1, 3)   # (B,K,3,3): ybar diag(wn) bbar_k^T
        H = Hk.mean(axis=1)                                 # Procrustes vs. the mean shape

        # Kabsch rotation (3x3 SVD kept in JAX — no Pallas linalg).
        # TODO(synk): SVD gradients can NaN for degenerate H; forward values are fine.
        U, _, Vt = jnp.linalg.svd(H)
        det = jnp.linalg.det(jnp.einsum('bij,bjk->bik', U, Vt))
        corr = jnp.concatenate([jnp.ones((B, 2), jnp.float32), det[:, None]], axis=-1)
        R = jnp.einsum('bij,bj,bjk->bik', U, corr, Vt)      # ybar ≈ R @ bbar

        # Shape coefficients: (A + lambda^2 I) c = tr(R^T Hk)
        # TODO(synk): original PACE enforces c >= 0 via a constrained/SDP solve.
        rhs = jnp.einsum('bij,bkij->bk', R, Hk)
        c = jnp.linalg.solve(jnp.broadcast_to(self.A_reg, (B, K, K)), rhs[..., None])

        # Translation: t = y_centroid - R * (sum_k c_k * model_centroid_k)
        t = ymean - jnp.einsum('bij,jk,bko->bio', R, self.bmeanT, c)
        return R, t, c

    def __call__(self, input_point_cloud, train=True):
        """input_point_cloud: (B,3,m) -> (R (B,3,3), t (B,3,1), c (B,K,1), keypoints (B,3,N))."""
        B, three, m = input_point_cloud.shape
        assert three == 3 and m % 8 == 0
        N, K = self.N, self.K

        # Point-major rows, coordinate lanes zero-padded 3->8 to match the padded w1 rows.
        # TODO(synk): for large m add a point-tile grid axis with a running max in VMEM
        # scratch (init under pl.when(step==0)) sized against the 16/32 MiB scoped-VMEM
        # defaults, and do this transpose inside the kernel to avoid an HBM round trip.
        pts = jnp.transpose(input_point_cloud, (0, 2, 1)).astype(jnp.float32)
        pts = jnp.pad(pts, ((0, 0), (0, 0), (0, 8 - 3)))               # (B, m, 8)

        kernel = functools.partial(_detector_pace_kernel, H1=self.H1, H2=self.H2,
                                   N=N, rows=self._rows)
        rows_total = self.param_slab.shape[0]
        out = pl.pallas_call(
            kernel,
            out_shape=jax.ShapeDtypeStruct((B, 3, _LANES), jnp.float32),
            grid_spec=pltpu.PrefetchScalarGridSpec(
                num_scalar_prefetch=0,
                grid=(B,),
                in_specs=[
                    pl.BlockSpec((None, m, 8), lambda b: (b, 0, 0)),       # per-batch points
                    pl.BlockSpec((rows_total, _LANES), lambda b: (0, 0)),  # params: staged once
                ],
                out_specs=pl.BlockSpec((None, 3, _LANES), lambda b: (b, 0, 0)),
            ),
            compiler_params=pltpu.CompilerParams(
                dimension_semantics=("parallel",)),                        # 2 TCs on v7x
        )(pts, self.param_slab)

        detected = out[:, :, :N]                              # (B, 3, N) keypoints
        mt = out[:, :, N:N + 3 * K]                           # (B, 3, 3K) cross-covariances^T
        ymean = out[:, :, N + 3 * K:N + 3 * K + 1]            # (B, 3, 1) weighted centroid

        # train=True (or keypoint_correction=False) path: keypoints == detected.
        R, t, c = self._pace_solve(mt, ymean)
        return R, t, c, detected


if __name__ == "__main__":
    key = jax.random.PRNGKey(0)
    k_mk, k_cad, k_pc, k_det = jax.random.split(key, 4)

    K, N, n_cad = 4, 8, 32
    B, m = 2, 128

    model_keypoints = jax.random.normal(k_mk, (K, 3, N), jnp.float32)
    cad_models = jax.random.normal(k_cad, (K, 3, n_cad), jnp.float32)
    model = ProposedModelPallas(model_keypoints, cad_models, key=k_det)

    x = jax.random.normal(k_pc, (B, 3, m), jnp.float32)       # (B, 3, m) point cloud
    R, t, c, keypoints = model(x, train=True)
    jax.block_until_ready((R, t, c, keypoints))

    assert R.shape == (B, 3, 3)
    assert t.shape == (B, 3, 1)
    assert c.shape == (B, K, 1)
    assert keypoints.shape == (B, 3, N)
    assert jnp.all(jnp.isfinite(R)) and jnp.all(jnp.isfinite(t))
    assert jnp.all(jnp.isfinite(c)) and jnp.all(jnp.isfinite(keypoints))
    print("KERNEL_OK")
</pallas_src>

<mosaic_0001>
module attributes {stable_mosaic.version = 11 : i64} {
  func.func @_detector_pace_kernel(%arg0: i32, %arg1: memref<1x128x8xf32, #tpu.memory_space<vmem>>, %arg2: memref<216x128xf32, #tpu.memory_space<vmem>>, %arg3: memref<1x3x128xf32, #tpu.memory_space<vmem>>) attributes {dimension_semantics = [#tpu.dimension_semantics<parallel>], iteration_bounds = array<i64: 2>, scalar_prefetch = 0 : i64, scratch_operands = 0 : i64, tpu.core_type = #tpu.core_type<tc>, window_params = [{transform_indices = @transform_0, window_bounds = array<i64: 1, 128, 8>}, {pipeline_mode = #tpu.pipeline_mode<synchronous>, transform_indices = @transform_1, window_bounds = array<i64: 216, 128>}, {transform_indices = @transform_2, window_bounds = array<i64: 1, 3, 128>}]} {
    %c0 = arith.constant 0 : index
    %c0_0 = arith.constant 0 : index
    %c0_1 = arith.constant 0 : index
    %0 = vector.load %arg1[%c0, %c0_0, %c0_1] : memref<1x128x8xf32, #tpu.memory_space<vmem>>, vector<1x128x8xf32>
    %1 = vector.shape_cast %0 : vector<1x128x8xf32> to vector<128x8xf32>
    %c0_2 = arith.constant 0 : index
    %c0_3 = arith.constant 0 : index
    %2 = vector.load %arg2[%c0_2, %c0_3] : memref<216x128xf32, #tpu.memory_space<vmem>>, vector<8x64xf32>
    %c8 = arith.constant 8 : index
    %c0_4 = arith.constant 0 : index
    %3 = vector.load %arg2[%c8, %c0_4] : memref<216x128xf32, #tpu.memory_space<vmem>>, vector<1x64xf32>
    %c9 = arith.constant 9 : index
    %c0_5 = arith.constant 0 : index
    %4 = vector.load %arg2[%c9, %c0_5] : memref<216x128xf32, #tpu.memory_space<vmem>>, vector<1x128xf32>
    %c10 = arith.constant 10 : index
    %c0_6 = arith.constant 0 : index
    %5 = vector.load %arg2[%c10, %c0_6] : memref<216x128xf32, #tpu.memory_space<vmem>>, vector<1x24xf32>
    %c16 = arith.constant 16 : index
    %c0_7 = arith.constant 0 : index
    %6 = vector.load %arg2[%c16, %c0_7] : memref<216x128xf32, #tpu.memory_space<vmem>>, vector<8x128xf32>
    %c24 = arith.constant 24 : index
    %c0_8 = arith.constant 0 : index
    %7 = vector.load %arg2[%c24, %c0_8] : memref<216x128xf32, #tpu.memory_space<vmem>>, vector<64x128xf32>
    %c88 = arith.constant 88 : index
    %c0_9 = arith.constant 0 : index
    %8 = vector.load %arg2[%c88, %c0_9] : memref<216x128xf32, #tpu.memory_space<vmem>>, vector<128x24xf32>
    %cst = arith.constant dense<0.000000e+00> : vector<128x64xf32>
    %9 = tpu.matmul %1, %2, %cst {dimension_numbers = #tpu.dot_dimension_numbers<[1], [0], [0], [1], [0, 0, 1, 1], [], []>} : vector<128x8xf32>, vector<8x64xf32>, vector<128x64xf32> -> vector<128x64xf32>
    %10 = vector.broadcast %3 : vector<1x64xf32> to vector<128x64xf32>
    %11 = arith.addf %9, %10 : vector<128x64xf32>
    %cst_10 = arith.constant 0.000000e+00 : f32
    %12 = vector.broadcast %cst_10 : f32 to vector<128x64xf32>
    %13 = arith.maximumf %11, %12 : vector<128x64xf32>
    %cst_11 = arith.constant dense<0.000000e+00> : vector<128x128xf32>
    %14 = tpu.matmul %13, %7, %cst_11 {dimension_numbers = #tpu.dot_dimension_numbers<[1], [0], [0], [1], [0, 0, 1, 1], [], []>} : vector<128x64xf32>, vector<64x128xf32>, vector<128x128xf32> -> vector<128x128xf32>
    %15 = vector.broadcast %4 : vector<1x128xf32> to vector<128x128xf32>
    %16 = arith.addf %14, %15 : vector<128x128xf32>
    %cst_12 = arith.constant 0.000000e+00 : f32
    %17 = vector.broadcast %cst_12 : f32 to vector<128x128xf32>
    %18 = arith.maximumf %16, %17 : vector<128x128xf32>
    %cst_13 = arith.constant dense<0xFF800000> : vector<128xf32>
    %19 = vector.multi_reduction <maximumf>, %18, %cst_13 [0] : vector<128x128xf32> to vector<128xf32>
    %20 = vector.shape_cast %19 : vector<128xf32> to vector<1x128xf32>
    %cst_14 = arith.constant dense<0.000000e+00> : vector<1x24xf32>
    %21 = tpu.matmul %20, %8, %cst_14 {dimension_numbers = #tpu.dot_dimension_numbers<[1], [0], [0], [1], [0, 0, 1, 1], [], []>} : vector<1x128xf32>, vector<128x24xf32>, vector<1x24xf32> -> vector<1x24xf32>
    %22 = arith.addf %21, %5 : vector<1x24xf32>
    %23 = vector.extract_strided_slice %22 {offsets = [0, 0], sizes = [1, 8], strides = [1, 1]} : vector<1x24xf32> to vector<1x8xf32>
    %24 = vector.extract_strided_slice %22 {offsets = [0, 8], sizes = [1, 8], strides = [1, 1]} : vector<1x24xf32> to vector<1x8xf32>
    %25 = vector.extract_strided_slice %22 {offsets = [0, 16], sizes = [1, 8], strides = [1, 1]} : vector<1x24xf32> to vector<1x8xf32>
    %26 = tpu.concatenate %23, %24, %25 in 0 : vector<1x8xf32>, vector<1x8xf32>, vector<1x8xf32> -> vector<3x8xf32>
    %cst_15 = arith.constant dense<0.000000e+00> : vector<3x128xf32>
    %27 = tpu.matmul %26, %6, %cst_15 {dimension_numbers = #tpu.dot_dimension_numbers<[1], [0], [0], [1], [0, 0, 1, 1], [], []>} : vector<3x8xf32>, vector<8x128xf32>, vector<3x128xf32> -> vector<3x128xf32>
    %c0_16 = arith.constant 0 : index
    %c0_17 = arith.constant 0 : index
    %c0_18 = arith.constant 0 : index
    %28 = vector.load %arg3[%c0_16, %c0_17, %c0_18] : memref<1x3x128xf32, #tpu.memory_space<vmem>>, vector<1x3x128xf32>
    %29 = vector.shape_cast %28 : vector<1x3x128xf32> to vector<3x128xf32>
    %30 = vector.shape_cast %27 : vector<3x128xf32> to vector<1x3x128xf32>
    tpu.vector_store %arg3[%c0_16, %c0_17, %c0_18], %30 {strides = array<i32>} : memref<1x3x128xf32, #tpu.memory_space<vmem>>, vector<1x3x128xf32>,
    return
  }
  func.func @transform_0(%arg0: i32) -> (i32, i32, i32) {
    %c0_i32 = arith.constant 0 : i32
    %c0_i32_0 = arith.constant 0 : i32
    %c0_i32_1 = arith.constant 0 : i32
    return %arg0, %c0_i32, %c0_i32_0 : i32, i32, i32
  }
  func.func @transform_1(%arg0: i32) -> (i32, i32) {
    %c0_i32 = arith.constant 0 : i32
    %c0_i32_0 = arith.constant 0 : i32
    %c0_i32_1 = arith.constant 0 : i32
    return %c0_i32, %c0_i32_0 : i32, i32
  }
  func.func @transform_2(%arg0: i32) -> (i32, i32, i32) {
    %c0_i32 = arith.constant 0 : i32
    %c0_i32_0 = arith.constant 0 : i32
    %c0_i32_1 = arith.constant 0 : i32
    return %arg0, %c0_i32, %c0_i32_0 : i32, i32, i32
  }
}

</mosaic_0001>

<bundles_post_ra>
// kernel: tpu_custom_call.1
= control target key start
LH: loop header
LB: loop body
LE: loop exit
PB: predicated region body
PF: predicated region fallthrough
CT: control target
= control target key end

     0   :  { %s1139_s9 = smov 0   ;;  %s1303_s0 = inlined_call_operand.vmem [shape: f32[2,128,8], index: 0, kind: input, shape index: {}]   ;;  %s1304_s1 = inlined_call_operand.vmem [shape: f32[216,128], index: 1, kind: input, shape index: {}]   ;;  %s1305_s2 = inlined_call_operand.vmem [shape: f32[2,3,128], index: 2, kind: output, shape index: {}]  }
   0x1 LB: > { %s846_s10 = sadd.s32 4294967295, %s1117_s9   ;;  %p850_p0 = scmp.ge.s32.totalorder %s1117_s9, 1  ;;  %s1117_s9 = sphi %s1139_s9, %s12_s9  }
   0x2   : > { %p112_p1 = scmp.lt.s32.totalorder %s1117_s9, 3 }
   0x4   : > { %p113_p2 = pnand %p850_p0, %p112_p1 }
   0x5   : > { %v158_v0 = vld [vmem:[%s1304_s1] sm:$0xff] (!%p113_p2)  ;;  %p133_p3 = scmp.lt.s32.totalorder (!%p113_p2), %s846_s10, 1  ;;  %v163_v1 = vld [vmem:[%s1304_s1 + $0x18] sm:$0xff] (!%p113_p2)  ;;  %v165_v4 = vld [vmem:[%s1304_s1 + $0x28] sm:$0xff] (!%p113_p2)  ;;  %vm191_vm0 = vcmask (!%p113_p2), 64512   ;;  %vm405_vm1 = vcmask (!%p113_p2), 523264  }
   0x6   : > { %116 = sbr.rel (%p113_p2) target bundleno = 1048 (0x418), region = 28  ;;  %v164_v2 = vld [vmem:[%s1304_s1 + $0x20] sm:$0xff] (!%p113_p2)  ;;  %952 = vmatprep.subr.mxu0 (!%p113_p2), %v158_v0  ;;  %v166_v5 = vld [vmem:[%s1304_s1 + $0x30] sm:$0xff] (!%p113_p2)  ;;  %v167_v7 = vld [vmem:[%s1304_s1 + $0x38] sm:$0xff] (!%p113_p2)  ;;  %vm1120_vm2 = vmmov (!%p113_p2), 0   ;;  %s1122_s21 = smov (!%p113_p2), 120  }
   0x7   : > { %v1058_v3 = vpack.c.bf16 (!%p113_p2), %v164_v2, %v163_v1  ;;  %953 = vmatpush3.msra.mxu0 (!%p113_p2), %v158_v0  ;;  %v1062_v6 = vpack.c.bf16 (!%p113_p2), %v166_v5, %v165_v4  ;;  %v168_v8 = vld [vmem:[%s1304_s1 + $0x40] sm:$0xff] (!%p113_p2)  ;;  %v169_v26 = vld [vmem:[%s1304_s1 + $0x48] sm:$0xff] (!%p113_p2)  ;;  %v170_v27 = vld [vmem:[%s1304_s1 + $0x50] sm:$0xff] (!%p113_p2)  ;;  %s1123_s22 = smov (!%p113_p2), 112   ;;  %vm715_vm3 = vcmask (!%p113_p2), 1040384   ;;  %vm717_vm4 = vcmask (!%p113_p2), 1041408  }
   0x8   : > { %v1066_v9 = vpack.c.bf16 (!%p113_p2), %v168_v8, %v167_v7  ;;  %v1070_v28 = vpack.c.bf16 (!%p113_p2), %v170_v27, %v169_v26  ;;  %v854_v29 = vld [vmem:[%s1304_s1 + $0x8] ss:$0 sm:$0xff] (!%p113_p2)  ;;  %v179_v27 = vld [vmem:[%s1304_s1 + $0x98] sm:$0xff] (!%p113_p2) }
   0x9   : > { %1059 = vmatprep.subr.bf16.mxu1 (!%p113_p2), %v1058_v3 }
   0xa   : > { %1061 = vmatpush3.bf16.msra.mxu1 (!%p113_p2), %v1058_v3 }
   0xb   : > { %1063 = vmatprep.subr.bf16.mxu1 (!%p113_p2), %v1062_v6 }
   0xd   : > { %s1307_s10 = smov (!%p133_p3, %s846_s10), 1 }
   0xe   : > { %s891_s25 = sshll.u32 %s1307_s10, 7  ;;  %1065 = vmatpush3.bf16.msra.mxu1 %v1062_v6  ;;  %s853_s23 = sshll.u32 %s1307_s10, 2 }
   0xf   : > { %s1174_s28 = scalar_lea.vmem %s1303_s0, %s891_s25  ;;  %1067 = vmatprep.subr.bf16.mxu1 %v1066_v9  ;;  %s141_s26 = scalar_lea.vmem %s1305_s2, %s853_s23 }
  0x10   : > { %v142_v10 = vld [vmem:[%s1174_s28] sm:$0xff]  ;;  %v143_v11 = vld [vmem:[%s1174_s28 + $0x8] sm:$0xff]  ;;  %v144_v12 = vld [vmem:[%s1174_s28 + $0x10] sm:$0xff] }
  0x11   : > { %954 = vmatprep.mubr.msk.f32.mxu0 %vm191_vm0, %v142_v10  ;;  %v145_v13 = vld [vmem:[%s1174_s28 + $0x18] sm:$0xff]  ;;  %v146_v14 = vld [vmem:[%s1174_s28 + $0x20] sm:$0xff]  ;;  %v147_v15 = vld [vmem:[%s1174_s28 + $0x28] sm:$0xff] }
  0x12   : > { %955 = vmatmul.mubr.msk.f32.vlgmr.msra.gmra.mrb[0].mxu0 %vm191_vm0, %v143_v11  ;;  %1069 = vmatpush3.bf16.msra.mxu1 %v1066_v9  ;;  %v148_v16 = vld [vmem:[%s1174_s28 + $0x30] sm:$0xff]  ;;  %v149_v17 = vld [vmem:[%s1174_s28 + $0x38] sm:$0xff]  ;;  %v150_v18 = vld [vmem:[%s1174_s28 + $0x40] sm:$0xff] }
  0x13   : > { %957 = vmatprep.mubr.msk.f32.mxu0 %vm191_vm0, %v144_v12  ;;  %v151_v19 = vld [vmem:[%s1174_s28 + $0x48] sm:$0xff]  ;;  %v152_v20 = vld [vmem:[%s1174_s28 + $0x50] sm:$0xff]  ;;  %v153_v21 = vld [vmem:[%s1174_s28 + $0x58] sm:$0xff]  ;;  %1071 = vmatprep.subr.bf16.mxu1 %v1070_v28 }
  0x14   : > { %v154_v22 = vld [vmem:[%s1174_s28 + $0x60] sm:$0xff]  ;;  %v155_v23 = vld [vmem:[%s1174_s28 + $0x68] sm:$0xff]  ;;  %v156_v24 = vld [vmem:[%s1174_s28 + $0x70] sm:$0xff] }
  0x15   : > { %v157_v25 = vld [vmem:[%s1174_s28 + $0x78] sm:$0xff] }
  0x16   : > { %958 = vmatmul.mubr.msk.f32.gmra.mrb[2].mxu0 %vm191_vm0, %v145_v13  ;;  %1073 = vmatpush3.bf16.msra.mxu1 %v1070_v28  ;;  %v180_v28 = vld [vmem:[%s1304_s1 + $0xa0] sm:$0xff] }
  0x17   : > { %960 = vmatprep.mubr.msk.f32.mxu0 %vm191_vm0, %v146_v14  ;;  %v171_v14 = vld [vmem:[%s1304_s1 + $0x58] sm:$0xff] }
  0x1a   : > { %961 = vmatmul.mubr.msk.f32.gmra.mrb[4].mxu0 %vm191_vm0, %v147_v15  ;;  %v172_v15 = vld [vmem:[%s1304_s1 + $0x60] sm:$0xff] }
  0x1b   : > { %963 = vmatprep.mubr.msk.f32.mxu0 %vm191_vm0, %v148_v16  ;;  %v1075_v16 = vpack.c.bf16 %v172_v15, %v171_v14 }
  0x1e   : > { %964 = vmatmul.mubr.msk.f32.gmra.mrb[6].mxu0 %vm191_vm0, %v149_v17  ;;  %v1119_v17 = vmov 0.0|0.0  }
  0x1f   : > { %966 = vmatprep.mubr.msk.f32.mxu0 %vm191_vm0, %v150_v18  ;;  %1074 = vmatprep.subr.bf16.mxu0 %v1119_v17  ;;  %v173_v18 = vld [vmem:[%s1304_s1 + $0x68] sm:$0xff] }
  0x20   : > { %1076 = vmatpush3.bf16.msra.mxu0 %v1075_v16 }
  0x21   : > { %1077 = vmatprep.subr.bf16.mxu0 %v1119_v17 }
  0x22   : > { %967 = vmatmul.mubr.msk.f32.gmra.mrb[8].mxu0 %vm191_vm0, %v151_v19  ;;  %v174_v19 = vld [vmem:[%s1304_s1 + $0x70] sm:$0xff] }
  0x23   : > { %969 = vmatprep.mubr.msk.f32.mxu0 %vm191_vm0, %v152_v20  ;;  %v1078_v20 = vpack.c.bf16 %v174_v19, %v173_v18 }
  0x25   : > { %1079 = vmatpush3.bf16.msra.mxu0 %v1078_v20 }
  0x26   : > { %970 = vmatmul.mubr.msk.f32.gmra.mrb[10].mxu0 %vm191_vm0, %v153_v21  ;;  %1080 = vmatprep.subr.bf16.mxu0 %v1119_v17  ;;  %v175_v21 = vld [vmem:[%s1304_s1 + $0x78] sm:$0xff] }
  0x27   : > { %972 = vmatprep.mubr.msk.f32.mxu0 %vm191_vm0, %v154_v22  ;;  %v176_v22 = vld [vmem:[%s1304_s1 + $0x80] sm:$0xff] }
  0x2a   : > { %973 = vmatmul.mubr.msk.f32.gmra.mrb[12].mxu0 %vm191_vm0, %v155_v23  ;;  %v1081_v23 = vpack.c.bf16 %v176_v22, %v175_v21 }
  0x2b   : > { %975 = vmatprep.mubr.msk.f32.mxu0 %vm191_vm0, %v156_v24  ;;  %v177_v24 = vld [vmem:[%s1304_s1 + $0x88] sm:$0xff] }
  0x2c   : > { %1082 = vmatpush3.bf16.msra.mxu0 %v1081_v23 }
  0x2d   : > { %1083 = vmatprep.subr.bf16.mxu0 %v1119_v17 }
  0x2e   : > { %976 = vmatmul.mubr.msk.f32.gmra.mrb[14].mxu0 %vm191_vm0, %v157_v25  ;;  %v178_v25 = vld [vmem:[%s1304_s1 + $0x90] sm:$0xff] }
  0x2f   : > { %v1084_v26 = vpack.c.bf16 %v178_v25, %v177_v24 }
  0x31   : > { %1085 = vmatpush3.bf16.msra.mxu0 %v1084_v26 }
  0x32   : > { %1086 = vmatprep.subr.bf16.mxu0 %v1119_v17 }
  0xe5   : > { %v956_v30 = vpop.f32.mrb[0].mxu0 }
  0xe6   : > { %v312_v31 = vadd.f32 %v956_v30, %v854_v29  ;;  %v306_v32 = vpop.f32.mrb[1].mxu0  ;;  %v181_v30 = vld [vmem:[%s1304_s1 + $0xa8] sm:$0xff] }
  0xe7   : > { %v307_v33 = vadd.f32 %v854_v29, %v306_v32 }
  0xe8   : > { %v386_v36 = vmax.f32 %v312_v31, 0.0  ;;  %v182_v31 = vld [vmem:[%s1304_s1 + $0xb0] sm:$0xff] }
  0xe9   : > { %v385_v34 = vmax.f32 %v307_v33, 0.0  ;;  %v959_v35 = vpop.f32.mrb[2].mxu0  ;;  %v1090_v32 = vpack.c.bf16 %v182_v31, %v181_v30  ;;  %v183_v33 = vld [vmem:[%s1304_s1 + $0xb8] sm:$0xff] }
  0xea   : > { %v322_v37 = vadd.f32 %v959_v35, %v854_v29  ;;  %v316_v38 = vpop.f32.mrb[3].mxu0 }
  0xeb   : > { %v317_v39 = vadd.f32 %v854_v29, %v316_v38  ;;  %994 = vmatprep.mubr.msk.f32.mxu1 %vm405_vm1, %v385_v34  ;;  %v184_v34 = vld [vmem:[%s1304_s1 + $0xc0] sm:$0xff] }
  0xec   : > { %995 = vmatmul.mubr.msk.f32.vlgmr.msra.gmra.mrb[0].mxu1 %vm405_vm1, %v386_v36  ;;  %v388_v42 = vmax.f32 %v322_v37, 0.0  ;;  %v1093_v35 = vpack.c.bf16 %v184_v34, %v183_v33  ;;  %v185_v36 = vld [vmem:[%s1304_s1 + $0xc8] sm:$0xff]  ;;  %v186_v37 = vld [vmem:[%s1304_s1 + $0xd0] sm:$0xff] }
  0xed   : > { %v387_v40 = vmax.f32 %v317_v39, 0.0  ;;  %v962_v41 = vpop.f32.mrb[4].mxu0  ;;  %v1096_v38 = vpack.c.bf16 %v186_v37, %v185_v36  ;;  %v1121_v39 = vmov 0.0  }
  0xee   : > { %v332_v43 = vadd.f32 %v962_v41, %v854_v29  ;;  %v326_v44 = vpop.f32.mrb[5].mxu0  ;;  %1050 = vmatprep.mubr.msk.f32.mxu0 %vm1120_vm2, %v1121_v39 }
  0xef   : > { %v327_v45 = vadd.f32 %v854_v29, %v326_v44  ;;  %997 = vmatprep.mubr.msk.f32.mxu1 %vm405_vm1, %v387_v40 }
  0xf0   : > { %998 = vmatmul.mubr.msk.f32.gmra.mrb[2].mxu1 %vm405_vm1, %v388_v42  ;;  %v390_v48 = vmax.f32 %v332_v43, 0.0  ;;  %v871_v42 = vld [vmem:[%s1304_s1 + $0x9] ss:$0 sm:$0xff] }
  0xf1   : > { %v389_v46 = vmax.f32 %v327_v45, 0.0  ;;  %v965_v47 = vpop.f32.mrb[6].mxu0 }
  0xf2   : > { %v342_v49 = vadd.f32 %v965_v47, %v854_v29  ;;  %v336_v50 = vpop.f32.mrb[7].mxu0 }
  0xf3   : > { %v337_v51 = vadd.f32 %v854_v29, %v336_v50  ;;  %1000 = vmatprep.mubr.msk.f32.mxu1 %vm405_vm1, %v389_v46 }
  0xf4   : > { %1001 = vmatmul.mubr.msk.f32.gmra.mrb[4].mxu1 %vm405_vm1, %v390_v48  ;;  %v392_v54 = vmax.f32 %v342_v49, 0.0 }
  0xf5   : > { %v391_v52 = vmax.f32 %v337_v51, 0.0  ;;  %v968_v53 = vpop.f32.mrb[8].mxu0 }
  0xf6   : > { %v352_v55 = vadd.f32 %v968_v53, %v854_v29  ;;  %v346_v56 = vpop.f32.mrb[9].mxu0 }
  0xf7   : > { %v347_v57 = vadd.f32 %v854_v29, %v346_v56  ;;  %1003 = vmatprep.mubr.msk.f32.mxu1 %vm405_vm1, %v391_v52 }
  0xf8   : > { %1004 = vmatmul.mubr.msk.f32.gmra.mrb[6].mxu1 %vm405_vm1, %v392_v54  ;;  %v394_v60 = vmax.f32 %v352_v55, 0.0 }
  0xf9   : > { %v393_v58 = vmax.f32 %v347_v57, 0.0  ;;  %v971_v59 = vpop.f32.mrb[10].mxu0 }
  0xfa   : > { %v362_v61 = vadd.f32 %v971_v59, %v854_v29  ;;  %v356_v62 = vpop.f32.mrb[11].mxu0 }
  0xfb   : > { %v357_v63 = vadd.f32 %v854_v29, %v356_v62  ;;  %1006 = vmatprep.mubr.msk.f32.mxu1 %vm405_vm1, %v393_v58 }
  0xfc   : > { %1007 = vmatmul.mubr.msk.f32.gmra.mrb[8].mxu1 %vm405_vm1, %v394_v60  ;;  %v396_v2 = vmax.f32 %v362_v61, 0.0 }
  0xfd   : > { %v395_v0 = vmax.f32 %v357_v63, 0.0  ;;  %v974_v1 = vpop.f32.mrb[12].mxu0 }
  0xfe   : > { %v372_v3 = vadd.f32 %v974_v1, %v854_v29  ;;  %v366_v4 = vpop.f32.mrb[13].mxu0 }
  0xff   : > { %v367_v5 = vadd.f32 %v854_v29, %v366_v4  ;;  %1009 = vmatprep.mubr.msk.f32.mxu1 %vm405_vm1, %v395_v0 }
 0x100   : > { %1010 = vmatmul.mubr.msk.f32.gmra.mrb[10].mxu1 %vm405_vm1, %v396_v2  ;;  %v398_v8 = vmax.f32 %v372_v3, 0.0 }
 0x101   : > { %v397_v6 = vmax.f32 %v367_v5, 0.0  ;;  %v977_v7 = vpop.f32.mrb[14].mxu0 }
 0x102   : > { %v382_v9 = vadd.f32 %v977_v7, %v854_v29  ;;  %v376_v10 = vpop.f32.mrb[15].mxu0 }
 0x103   : > { %v377_v11 = vadd.f32 %v854_v29, %v376_v10  ;;  %1012 = vmatprep.mubr.msk.f32.mxu1 %vm405_vm1, %v397_v6  ;;  %v1087_v29 = vpack.c.bf16 %v180_v28, %v179_v27 }
 0x104   : > { %1013 = vmatmul.mubr.msk.f32.gmra.mrb[12].mxu1 %vm405_vm1, %v398_v8  ;;  %v400_v13 = vmax.f32 %v382_v9, 0.0 }
 0x105   : > { %v399_v12 = vmax.f32 %v377_v11, 0.0  ;;  %1088 = vmatpush3.bf16.msra.mxu0 %v1087_v29 }
 0x106   : > { %1089 = vmatprep.subr.bf16.mxu0 %v1119_v17 }
 0x107   : > { %1015 = vmatprep.mubr.msk.f32.mxu1 %vm405_vm1, %v399_v12 }
 0x108   : > { %1016 = vmatmul.mubr.msk.f32.gmra.mrb[14].mxu1 %vm405_vm1, %v400_v13 }
 0x109   : > { %1091 = vmatpush3.bf16.msra.mxu0 %v1090_v32 }
 0x10a   : > { %1092 = vmatprep.subr.bf16.mxu0 %v1119_v17 }
 0x10d   : > { %1094 = vmatpush3.bf16.msra.mxu0 %v1093_v35 }
 0x10e   : > { %1095 = vmatprep.subr.bf16.mxu0 %v1119_v17 }
 0x111   : > { %1097 = vmatpush3.bf16.msra.mxu0 %v1096_v38 }
 0x112   : > { %1053 = vmatprep.subr.mxu0 %v1121_v39 }
 0x1bf   : > { %v996_v40 = vpop.f32.mrb[0].mxu1 }
 0x1c0   : > { %v520_v41 = vpop.f32.mrb[1].mxu1  ;;  %v526_v45 = vadd.f32 %v996_v40, %v871_v42 }
 0x1c1   : > { %v521_v46 = vadd.f32 %v871_v42, %v520_v41 }
 0x1c2   : > { %v600_v51 = vmax.f32 %v526_v45, 0.0 }
 0x1c3   : > { %v999_v43 = vpop.f32.mrb[2].mxu1  ;;  %v599_v54 = vmax.f32 %v521_v46, 0.0 }
 0x1c4   : > { %v530_v44 = vpop.f32.mrb[3].mxu1  ;;  %v536_v52 = vadd.f32 %v999_v43, %v871_v42 }
 0x1c5   : > { %v531_v55 = vadd.f32 %v871_v42, %v530_v44 }
 0x1c6   : > { %v602_v63 = vmax.f32 %v536_v52, 0.0 }
 0x1c7   : > { %v1002_v47 = vpop.f32.mrb[4].mxu1  ;;  %v601_v1 = vmax.f32 %v531_v55, 0.0 }
 0x1c8   : > { %v546_v48 = vadd.f32 %v1002_v47, %v871_v42  ;;  %v540_v49 = vpop.f32.mrb[5].mxu1 }
 0x1c9   : > { %v541_v50 = vadd.f32 %v871_v42, %v540_v49 }
 0x1ca   : > { %v604_v53 = vmax.f32 %v546_v48, 0.0  ;;  %v161_v48 = vld [vmem:[%s1304_s1 + $0xa] sm:$0x1] }
 0x1cb   : > { %v603_v56 = vmax.f32 %v541_v50, 0.0  ;;  %v1005_v57 = vpop.f32.mrb[6].mxu1 }
 0x1cc   : > { %v616_v58 = vmax.f32 %v600_v51, %v604_v53  ;;  %v556_v59 = vadd.f32 %v1005_v57, %v871_v42  ;;  %v550_v60 = vpop.f32.mrb[7].mxu1 }
 0x1cd   : > { %v615_v61 = vmax.f32 %v599_v54, %v603_v56  ;;  %v551_v62 = vadd.f32 %v871_v42, %v550_v60 }
 0x1ce   : > { %v606_v0 = vmax.f32 %v556_v59, 0.0 }
 0x1cf   : > { %v605_v2 = vmax.f32 %v551_v62, 0.0  ;;  %v1008_v3 = vpop.f32.mrb[8].mxu1 }
 0x1d0   : > { %v618_v4 = vmax.f32 %v602_v63, %v606_v0  ;;  %v566_v5 = vadd.f32 %v1008_v3, %v871_v42  ;;  %v560_v6 = vpop.f32.mrb[9].mxu1 }
 0x1d1   : > { %v617_v7 = vmax.f32 %v601_v1, %v605_v2  ;;  %v561_v8 = vadd.f32 %v871_v42, %v560_v6 }
 0x1d2   : > { %v608_v9 = vmax.f32 %v566_v5, 0.0 }
 0x1d3   : > { %v607_v10 = vmax.f32 %v561_v8, 0.0  ;;  %v1011_v11 = vpop.f32.mrb[10].mxu1 }
 0x1d4   : > { %v620_v12 = vmax.f32 %v616_v58, %v608_v9  ;;  %v576_v13 = vadd.f32 %v1011_v11, %v871_v42  ;;  %v570_v14 = vpop.f32.mrb[11].mxu1 }
 0x1d5   : > { %v619_v15 = vmax.f32 %v615_v61, %v607_v10  ;;  %v571_v16 = vadd.f32 %v871_v42, %v570_v14 }
 0x1d6   : > { %v610_v17 = vmax.f32 %v576_v13, 0.0 }
 0x1d7   : > { %v609_v18 = vmax.f32 %v571_v16, 0.0  ;;  %v1014_v19 = vpop.f32.mrb[12].mxu1 }
 0x1d8   : > { %v622_v20 = vmax.f32 %v618_v4, %v610_v17  ;;  %v586_v21 = vadd.f32 %v1014_v19, %v871_v42  ;;  %v580_v22 = vpop.f32.mrb[13].mxu1 }
 0x1d9   : > { %v621_v23 = vmax.f32 %v617_v7, %v609_v18  ;;  %v581_v24 = vadd.f32 %v871_v42, %v580_v22 }
 0x1da   : > { %v612_v25 = vmax.f32 %v586_v21, 0.0 }
 0x1db   : > { %v611_v26 = vmax.f32 %v581_v24, 0.0  ;;  %v1017_v27 = vpop.f32.mrb[14].mxu1 }
 0x1dc   : > { %v624_v28 = vmax.f32 %v620_v12, %v612_v25  ;;  %v596_v29 = vadd.f32 %v1017_v27, %v871_v42  ;;  %v590_v30 = vpop.f32.mrb[15].mxu1 }
 0x1dd   : > { %v623_v31 = vmax.f32 %v619_v15, %v611_v26  ;;  %v591_v32 = vadd.f32 %v871_v42, %v590_v30  ;;  %v162_v42 = vld [vmem:[%s1304_s1 + $0x10] sm:$0xff] }
 0x1de   : > { %v614_v33 = vmax.f32 %v596_v29, 0.0 }
 0x1df   : > { %v627_v34 = vmax.f32 %v623_v31, %v624_v28  ;;  %v613_v35 = vmax.f32 %v591_v32, 0.0 }
 0x1e0   : > { %v626_v36 = vmax.f32 %v622_v20, %v614_v33 }
 0x1e1   : > { %v625_v37 = vmax.f32 %v621_v23, %v613_v35 }
 0x1e3   : > { %v628_v38 = vmax.f32 %v625_v37, %v626_v36 }
 0x1e5   : > { %v629_v40 = vmax.f32 %v627_v34, %v628_v38 }
 0x1e7   : > { %v630_v41 = vrot.slane %v629_v40, 4 }
 0x1e9   : > { %v631_v43 = vmax.f32 %v629_v40, %v630_v41 }
 0x1eb   : > { %v632_v44 = vrot.slane %v631_v43, 2 }
 0x1ed   : > { %v633_v45 = vmax.f32 %v631_v43, %v632_v44 }
 0x1ef   : > { %v634_v46 = vrot.slane %v633_v45, 1 }
 0x1f1   : > { %v635_v47 = vmax.f32 %v633_v45, %v634_v46 }
 0x1f3   : > { %1051 = vmatmul.mubr.f32.vlgmr.msra.gmra.mrb[16].mxu0 %v635_v47 }
 0x1f4   : > { %1055 = vmatprep.mubr.msk.f32.mxu0 %vm1120_vm2, %v1121_v39  ;;  %1054 = vmatpush3.msra.mxu0 %v162_v42 }
 0x2c6   : > { %v702_v49 = vpop.f32.mrb[16].mxu0 }
 0x2c7   : > { %v703_v50 = vadd.f32 %v702_v49, %v161_v48  ;;  %v1052_v51 = vpop.f32.mrb[17].mxu0 }
 0x2c9   : > { %v707_v52 = vrot.slane %v703_v50, 7  ;;  %v711_v53 = vrot.slane %v703_v50, 6 }
 0x2cb   : > { %708 = vrot.lane.b32.xlu0 %v707_v52, %s1122_s21 }
 0x2cf   : > { %712 = vrot.lane.b32.xlu0 %v711_v53, %s1123_s22 }
 0x33d   : > { %v709_v39 = vpop.permute.xlu0 %708 }
 0x33e   : > { %v716_v54 = vsel %vm715_vm3, %v703_v50, %v709_v39 }
 0x341   : > { %v713_v55 = vpop.permute.xlu0 %712 }
 0x342   : > { %v718_v56 = vsel %vm717_vm4, %v716_v54, %v713_v55 }
 0x343   : > { %1056 = vmatmul.mubr.msk.f32.vlgmr.msra.gmra.mrb[18].mxu0 %vm191_vm0, %v718_v56 }
 0x416   : > { %v788_v57 = vpop.f32.mrb[18].mxu0 }
 0x417   : > { %792 = vst [vmem:[%s141_s26] sm:$0x7] %v788_v57  ;;  %v1057_v58 = vpop.f32.mrb[19].mxu0 }
 0x418 PF: > { %s12_s9 = sadd.s32 1, %s1117_s9  }
 0x419   : > { %p9_p4 = scmp.ge.s32.totalorder %s12_s9, 4  }
 0x41b   :  { %11 = sbr.rel (!%p9_p4) target bundleno = 1 (0x1), region = 58 }

</bundles_post_ra>
